<compile_context>
chip_gen: v7x
topology: tpu7x:2x2x1
jax: 0.10.0
libtpu: 0.0.40
codegen_flags: <defaults>
</compile_context>

<pallas_src>
import jax
import jax.numpy as jnp
from jax.experimental import pallas as pl
from jax.experimental.pallas import tpu as pltpu


EPS = 1e-6


def _round_up(x, m):
    return ((x + m - 1) // m) * m


def _make_packed_kernel(d):
    """Lane-packed kernel: tiles are (tm, 128); each lane row holds 128//d heads.

    Per-head sum of squares is a segmented reduction done with one block-diagonal
    0/1 matmul on the MXU (DEFAULT precision: one bf16 pass), which also broadcasts
    the per-head sum back to every lane of that head. For d == 128 the seg matrix is
    all ones and this is just the full-row reduce + broadcast on the MXU.
    """
    inv_d = 1.0 / float(d)

    def kernel(q_ref, k_ref, qs_ref, ks_ref, seg_ref, qo_ref, ko_ref):
        q = q_ref[...].astype(jnp.float32)
        k = k_ref[...].astype(jnp.float32)
        seg = seg_ref[...]                       # (lane, lane) block-diag 0/1, f32
        qs = qs_ref[...].astype(jnp.float32)     # (1, lane) tiled scale
        ks = ks_ref[...].astype(jnp.float32)

        q_ssq = jnp.dot(q * q, seg, preferred_element_type=jnp.float32)
        k_ssq = jnp.dot(k * k, seg, preferred_element_type=jnp.float32)

        q_rrms = jax.lax.rsqrt(q_ssq * inv_d + EPS)
        k_rrms = jax.lax.rsqrt(k_ssq * inv_d + EPS)

        qo_ref[...] = (q * q_rrms * qs).astype(qo_ref.dtype)
        ko_ref[...] = (k * k_rrms * ks).astype(ko_ref.dtype)

    return kernel


def _make_plain_kernel():
    """Fallback kernel for non-packable head dims (e.g. D=96, D=192): XLU row reduce."""

    def kernel(q_ref, k_ref, qs_ref, ks_ref, qo_ref, ko_ref):
        q = q_ref[...].astype(jnp.float32)
        k = k_ref[...].astype(jnp.float32)
        qs = qs_ref[...].astype(jnp.float32)
        ks = ks_ref[...].astype(jnp.float32)

        q_rrms = jax.lax.rsqrt(jnp.mean(q * q, axis=-1, keepdims=True) + EPS)
        k_rrms = jax.lax.rsqrt(jnp.mean(k * k, axis=-1, keepdims=True) + EPS)

        qo_ref[...] = (q * q_rrms * qs).astype(qo_ref.dtype)
        ko_ref[...] = (k * k_rrms * ks).astype(ko_ref.dtype)

    return kernel


def qknorm(q, k, v, query_scale, key_scale, *, tile_rows=2048, min_steps=8):
    """QKNorm forward. q, k, v: (B, H, L, D). Returns (q_norm, k_norm) in v.dtype."""
    assert q.shape == k.shape
    B, H, L, D = q.shape
    N = B * H * L
    out_dtype = v.dtype

    # Lane-dense packing whenever D divides 128 (includes D == 128 itself).
    use_packed = (D <= 128) and (128 % D == 0)
    # TODO(synk): D < 128 with 128 % D != 0 (e.g. 96) falls to the plain path with a
    # lane-sparse last dim; LCM-based lane folding would avoid masked partial stores.
    G = (128 // D) if use_packed else 1
    lane = G * D

    q2 = q.reshape(N, D)
    k2 = k.reshape(N, D)
    if use_packed:
        mp = -(-N // G)
        if mp * G != N:                 # tiny pad only up to a multiple of G (rare)
            pad = ((0, mp * G - N), (0, 0))
            q2 = jnp.pad(q2, pad)
            k2 = jnp.pad(k2, pad)
        q2 = q2.reshape(mp, lane)
        k2 = k2.reshape(mp, lane)
    else:
        mp = N

    # Tile size: big enough to amortize per-step overhead, small enough to keep
    # >= min_steps grid steps (pipelining + v7x megacore) and fit comfortably in VMEM.
    tm = min(_round_up(tile_rows, 16), 2048, _round_up(mp, 16))
    cap = (mp // min_steps) // 16 * 16
    if cap >= 16:
        tm = min(tm, cap)
    tm = max(tm, 16)
    grid = (pl.cdiv(mp, tm),)           # ragged last block handled by Pallas masking

    # Per-head scale, tiled across the packed heads of a lane row.
    qs1 = query_scale.reshape(-1)
    ks1 = key_scale.reshape(-1)
    if G > 1:
        qs1 = jnp.tile(qs1, G)
        ks1 = jnp.tile(ks1, G)
    qs = qs1.reshape(1, lane)
    ks = ks1.reshape(1, lane)

    row_spec = pl.BlockSpec((tm, lane), lambda i: (i, 0))
    vec_spec = pl.BlockSpec((1, lane), lambda i: (0, 0))

    in_arrays = [q2, k2, qs, ks]
    in_specs = [row_spec, row_spec, vec_spec, vec_spec]

    if use_packed:
        ids = jnp.arange(lane) // D
        seg = (ids[:, None] == ids[None, :]).astype(jnp.float32)   # (lane, lane)
        in_arrays.append(seg)
        in_specs.append(pl.BlockSpec((lane, lane), lambda i: (0, 0)))
        kernel = _make_packed_kernel(D)
    else:
        kernel = _make_plain_kernel()

    item_in = jnp.dtype(q.dtype).itemsize
    item_out = jnp.dtype(out_dtype).itemsize
    elems = mp * lane
    bytes_accessed = 2 * elems * (item_in + item_out) + 2 * lane * 4
    flops = 6 * elems
    transcendentals = 2 * (elems if use_packed else mp)
    if use_packed:
        bytes_accessed += lane * lane * 4
        flops += 4 * mp * lane * lane           # both q and k seg matmuls, one pass
    cost = pl.CostEstimate(flops=flops, transcendentals=transcendentals,
                           bytes_accessed=bytes_accessed)

    q_out, k_out = pl.pallas_call(
        kernel,
        out_shape=(
            jax.ShapeDtypeStruct((mp, lane), out_dtype),
            jax.ShapeDtypeStruct((mp, lane), out_dtype),
        ),
        grid_spec=pltpu.PrefetchScalarGridSpec(
            num_scalar_prefetch=0,
            grid=grid,
            in_specs=in_specs,
            out_specs=[row_spec, row_spec],
        ),
        compiler_params=pltpu.CompilerParams(
            dimension_semantics=("parallel",),
            vmem_limit_bytes=32 * 1024 * 1024,
        ),
        cost_estimate=cost,
    )(*in_arrays)

    q_out = q_out.reshape(mp * G, D)
    k_out = k_out.reshape(mp * G, D)
    if mp * G != N:
        q_out = q_out[:N]
        k_out = k_out[:N]
    return q_out.reshape(B, H, L, D), k_out.reshape(B, H, L, D)


def qknorm_ref(q, k, v, query_scale, key_scale):
    def rms(x, s):
        xf = x.astype(jnp.float32)
        rr = jax.lax.rsqrt(jnp.mean(xf * xf, axis=-1, keepdims=True) + EPS)
        return (xf * rr) * s.astype(jnp.float32)
    return (rms(q, query_scale).astype(v.dtype),
            rms(k, key_scale).astype(v.dtype))


def _check(q, kk, v, qscale, kscale):
    q_out, k_out = qknorm(q, kk, v, qscale, kscale)
    q_out, k_out = jax.block_until_ready((q_out, k_out))
    q_ref, k_ref = qknorm_ref(q, kk, v, qscale, kscale)
    assert q_out.dtype == v.dtype and k_out.dtype == v.dtype
    assert q_out.shape == q.shape and k_out.shape == kk.shape
    assert jnp.allclose(q_out.astype(jnp.float32), q_ref.astype(jnp.float32),
                        atol=1e-2, rtol=1e-2)
    assert jnp.allclose(k_out.astype(jnp.float32), k_ref.astype(jnp.float32),
                        atol=1e-2, rtol=1e-2)


if __name__ == "__main__":
    key = jax.random.PRNGKey(0)

    # Case 1: small head dim (D=32) — lane-dense packed path (G=4), bf16 output dtype.
    B, H, L, D = 2, 4, 8, 32
    k1, k2, k3, k4, k5 = jax.random.split(key, 5)
    q = jax.random.normal(k1, (B, H, L, D), dtype=jnp.float32)
    kk = jax.random.normal(k2, (B, H, L, D), dtype=jnp.float32)
    v = jax.random.normal(k3, (B, H, L, D), dtype=jnp.bfloat16)   # defines output dtype
    query_scale = 1.0 + 0.1 * jax.random.normal(k4, (D,), dtype=jnp.float32)
    key_scale = 1.0 + 0.1 * jax.random.normal(k5, (D,), dtype=jnp.float32)
    _check(q, kk, v, query_scale, key_scale)

    # Case 2: D=128 (flux head dim), non-tile-aligned row count — seg matmul with G=1,
    # ragged last block handled by Pallas masking (no pad / no output slice).
    B2, H2, L2, D2 = 1, 2, 9, 128
    k6, k7, k8, k9, k10 = jax.random.split(jax.random.PRNGKey(1), 5)
    q2 = jax.random.normal(k6, (B2, H2, L2, D2), dtype=jnp.float32)
    kk2 = jax.random.normal(k7, (B2, H2, L2, D2), dtype=jnp.float32)
    v2 = jax.random.normal(k8, (B2, H2, L2, D2), dtype=jnp.float32)
    qs2 = 1.0 + 0.1 * jax.random.normal(k9, (D2,), dtype=jnp.float32)
    ks2 = 1.0 + 0.1 * jax.random.normal(k10, (D2,), dtype=jnp.float32)
    _check(q2, kk2, v2, qs2, ks2)

    print("KERNEL_OK")
</pallas_src>

<mosaic_0001>
module attributes {stable_mosaic.version = 11 : i64} {
  func.func @kernel(%arg0: i32, %arg1: memref<16x128xf32, #tpu.memory_space<vmem>>, %arg2: memref<16x128xf32, #tpu.memory_space<vmem>>, %arg3: memref<1x128xf32, #tpu.memory_space<vmem>>, %arg4: memref<1x128xf32, #tpu.memory_space<vmem>>, %arg5: memref<128x128xf32, #tpu.memory_space<vmem>>, %arg6: memref<16x128xbf16, #tpu.memory_space<vmem>>, %arg7: memref<16x128xbf16, #tpu.memory_space<vmem>>) attributes {dimension_semantics = [#tpu.dimension_semantics<parallel>], iteration_bounds = array<i64: 1>, scalar_prefetch = 0 : i64, scratch_operands = 0 : i64, tpu.core_type = #tpu.core_type<tc>, window_params = [{transform_indices = @transform_0, window_bounds = array<i64: 16, 128>}, {transform_indices = @transform_1, window_bounds = array<i64: 16, 128>}, {pipeline_mode = #tpu.pipeline_mode<synchronous>, transform_indices = @transform_2, window_bounds = array<i64: 1, 128>}, {pipeline_mode = #tpu.pipeline_mode<synchronous>, transform_indices = @transform_3, window_bounds = array<i64: 1, 128>}, {pipeline_mode = #tpu.pipeline_mode<synchronous>, transform_indices = @transform_4, window_bounds = array<i64: 128, 128>}, {transform_indices = @transform_5, window_bounds = array<i64: 16, 128>}, {transform_indices = @transform_6, window_bounds = array<i64: 16, 128>}]} {
    %c0 = arith.constant 0 : index
    %c0_0 = arith.constant 0 : index
    %0 = vector.load %arg1[%c0, %c0_0] : memref<16x128xf32, #tpu.memory_space<vmem>>, vector<16x128xf32>
    %c0_1 = arith.constant 0 : index
    %c0_2 = arith.constant 0 : index
    %1 = vector.load %arg2[%c0_1, %c0_2] : memref<16x128xf32, #tpu.memory_space<vmem>>, vector<16x128xf32>
    %c0_3 = arith.constant 0 : index
    %c0_4 = arith.constant 0 : index
    %2 = vector.load %arg5[%c0_3, %c0_4] : memref<128x128xf32, #tpu.memory_space<vmem>>, vector<128x128xf32>
    %c0_5 = arith.constant 0 : index
    %c0_6 = arith.constant 0 : index
    %3 = vector.load %arg3[%c0_5, %c0_6] : memref<1x128xf32, #tpu.memory_space<vmem>>, vector<1x128xf32>
    %c0_7 = arith.constant 0 : index
    %c0_8 = arith.constant 0 : index
    %4 = vector.load %arg4[%c0_7, %c0_8] : memref<1x128xf32, #tpu.memory_space<vmem>>, vector<1x128xf32>
    %5 = arith.mulf %0, %0 : vector<16x128xf32>
    %cst = arith.constant dense<0.000000e+00> : vector<16x128xf32>
    %6 = tpu.matmul %5, %2, %cst {dimension_numbers = #tpu.dot_dimension_numbers<[1], [0], [0], [1], [0, 0, 1, 1], [], []>} : vector<16x128xf32>, vector<128x128xf32>, vector<16x128xf32> -> vector<16x128xf32>
    %7 = arith.mulf %1, %1 : vector<16x128xf32>
    %cst_9 = arith.constant dense<0.000000e+00> : vector<16x128xf32>
    %8 = tpu.matmul %7, %2, %cst_9 {dimension_numbers = #tpu.dot_dimension_numbers<[1], [0], [0], [1], [0, 0, 1, 1], [], []>} : vector<16x128xf32>, vector<128x128xf32>, vector<16x128xf32> -> vector<16x128xf32>
    %cst_10 = arith.constant 3.125000e-02 : f32
    %9 = vector.broadcast %cst_10 : f32 to vector<16x128xf32>
    %10 = arith.mulf %6, %9 : vector<16x128xf32>
    %cst_11 = arith.constant 9.99999997E-7 : f32
    %11 = vector.broadcast %cst_11 : f32 to vector<16x128xf32>
    %12 = arith.addf %10, %11 : vector<16x128xf32>
    %13 = math.rsqrt %12 : vector<16x128xf32>
    %cst_12 = arith.constant 3.125000e-02 : f32
    %14 = vector.broadcast %cst_12 : f32 to vector<16x128xf32>
    %15 = arith.mulf %8, %14 : vector<16x128xf32>
    %cst_13 = arith.constant 9.99999997E-7 : f32
    %16 = vector.broadcast %cst_13 : f32 to vector<16x128xf32>
    %17 = arith.addf %15, %16 : vector<16x128xf32>
    %18 = math.rsqrt %17 : vector<16x128xf32>
    %19 = arith.mulf %0, %13 : vector<16x128xf32>
    %20 = vector.broadcast %3 : vector<1x128xf32> to vector<16x128xf32>
    %21 = arith.mulf %19, %20 : vector<16x128xf32>
    %22 = arith.truncf %21 : vector<16x128xf32> to vector<16x128xbf16>
    %c0_14 = arith.constant 0 : index
    %c0_15 = arith.constant 0 : index
    %23 = vector.load %arg6[%c0_14, %c0_15] : memref<16x128xbf16, #tpu.memory_space<vmem>>, vector<16x128xbf16>
    tpu.vector_store %arg6[%c0_14, %c0_15], %22 {strides = array<i32>} : memref<16x128xbf16, #tpu.memory_space<vmem>>, vector<16x128xbf16>,
    %24 = arith.mulf %1, %18 : vector<16x128xf32>
    %25 = vector.broadcast %4 : vector<1x128xf32> to vector<16x128xf32>
    %26 = arith.mulf %24, %25 : vector<16x128xf32>
    %27 = arith.truncf %26 : vector<16x128xf32> to vector<16x128xbf16>
    %c0_16 = arith.constant 0 : index
    %c0_17 = arith.constant 0 : index
    %28 = vector.load %arg7[%c0_16, %c0_17] : memref<16x128xbf16, #tpu.memory_space<vmem>>, vector<16x128xbf16>
    tpu.vector_store %arg7[%c0_16, %c0_17], %27 {strides = array<i32>} : memref<16x128xbf16, #tpu.memory_space<vmem>>, vector<16x128xbf16>,
    return
  }
  func.func @transform_0(%arg0: i32) -> (i32, i32) {
    %c0_i32 = arith.constant 0 : i32
    %c0_i32_0 = arith.constant 0 : i32
    return %arg0, %c0_i32 : i32, i32
  }
  func.func @transform_1(%arg0: i32) -> (i32, i32) {
    %c0_i32 = arith.constant 0 : i32
    %c0_i32_0 = arith.constant 0 : i32
    return %arg0, %c0_i32 : i32, i32
  }
  func.func @transform_2(%arg0: i32) -> (i32, i32) {
    %c0_i32 = arith.constant 0 : i32
    %c0_i32_0 = arith.constant 0 : i32
    %c0_i32_1 = arith.constant 0 : i32
    return %c0_i32, %c0_i32_0 : i32, i32
  }
  func.func @transform_3(%arg0: i32) -> (i32, i32) {
    %c0_i32 = arith.constant 0 : i32
    %c0_i32_0 = arith.constant 0 : i32
    %c0_i32_1 = arith.constant 0 : i32
    return %c0_i32, %c0_i32_0 : i32, i32
  }
  func.func @transform_4(%arg0: i32) -> (i32, i32) {
    %c0_i32 = arith.constant 0 : i32
    %c0_i32_0 = arith.constant 0 : i32
    %c0_i32_1 = arith.constant 0 : i32
    return %c0_i32, %c0_i32_0 : i32, i32
  }
  func.func @transform_5(%arg0: i32) -> (i32, i32) {
    %c0_i32 = arith.constant 0 : i32
    %c0_i32_0 = arith.constant 0 : i32
    return %arg0, %c0_i32 : i32, i32
  }
  func.func @transform_6(%arg0: i32) -> (i32, i32) {
    %c0_i32 = arith.constant 0 : i32
    %c0_i32_0 = arith.constant 0 : i32
    return %arg0, %c0_i32 : i32, i32
  }
}

</mosaic_0001>

<bundles_post_ra>
// kernel: tpu_custom_call.1
= control target key start
LH: loop header
LB: loop body
LE: loop exit
PB: predicated region body
PF: predicated region fallthrough
CT: control target
= control target key end

     0   :  { %12 = vsyncpa [#allocation3], 0  ;;  %s795_s0 = inlined_call_operand.hbm [shape: f32[16,128], index: 0, kind: input, shape index: {}]   ;;  %s796_s1 = inlined_call_operand.hbm [shape: f32[16,128], index: 1, kind: input, shape index: {}]   ;;  %s797_s2 = inlined_call_operand.vmem [shape: f32[1,128], index: 2, kind: input, shape index: {}]   ;;  %s798_s3 = inlined_call_operand.vmem [shape: f32[1,128], index: 3, kind: input, shape index: {}]   ;;  %s799_s4 = inlined_call_operand.hbm [shape: f32[128,128], index: 4, kind: input, shape index: {}]   ;;  %s800_s5 = inlined_call_operand.hbm [shape: bf16[16,128], index: 5, kind: output, shape index: {0}]   ;;  %s801_s6 = inlined_call_operand.hbm [shape: bf16[16,128], index: 6, kind: output, shape index: {1}]  }
   0x1   :  { %13 = vsyncpa [#allocation6], 0 }
   0x2   :  { %14 = vsyncpa [#allocation4], 0 }
   0x3   :  { %15 = vsyncpa [#allocation10], 0  ;;  %s652_s21 = smov [#allocation5]   ;;  %s653_s23 = smov [#allocation2]  }
   0x4   :  { %s33_s22 = sshll.u32 %s652_s21, 4  ;;  %s21_s24 = sshll.u32 %s653_s23, 4  ;;  %s34_s22 = int_to_ptr.vmem [resolvable:$true] %s33_s22  ;;  %s696_s24 = int_to_ptr.vmem [resolvable:$true] %s21_s24 }
   0x5   :  { %s534_s27 = scalar_lea.hbm %s796_s1, 256 }
   0x6   :  { %p535_p0 = scmp.ne.s32.totalorder %s796_s1, %s534_s27  ;;  %p538_p1 = scmp.lt.u32.totalorder %s534_s27, %s796_s1 }
   0x8   :  { %p540_p2 = pnand %p538_p1, %p535_p0 }
   0xa   :  { %543 = shalt.err (!%p540_p2)
}
   0xb   :  { %s544_s8 = scalar_lea.vmem %s34_s22, 256  ;;  %p549_p4 = scmp.lt.s32.totalorder %s34_s22, %s34_s22 }
   0xc   :  { %p545_p3 = scmp.ne.s32.totalorder %s34_s22, %s544_s8  ;;  %p550_p5 = scmp.lt.s32.totalorder %s544_s8, %s544_s8 }
   0xe   :  { %p551_p6 = por %p550_p5, %p549_p4 }
  0x10   :  { %p552_p7 = pnand %p551_p6, %p545_p3 }
  0x12   :  { %555 = shalt.err (!%p552_p7)
}
  0x13   :  { %s654_s9 = smov 128   ;;  %s655_s10 = smov 8  }
  0x14   :  { %39 = dma.hbm_to_vmem [thread:$0]  %s796_s1, 256, %s34_s22, [#allocation6], %s654_s9, %s654_s9, %s655_s10  }
  0x15   :  { %s556_s15 = scalar_lea.hbm %s795_s0, 256 }
  0x16   :  { %p557_p8 = scmp.ne.s32.totalorder %s795_s0, %s556_s15  ;;  %p560_p9 = scmp.lt.u32.totalorder %s556_s15, %s795_s0 }
  0x18   :  { %p562_p10 = pnand %p560_p9, %p557_p8 }
  0x1a   :  { %565 = shalt.err (!%p562_p10)
}
  0x1b   :  { %s566_s20 = scalar_lea.vmem %s696_s24, 256  ;;  %p571_p12 = scmp.lt.s32.totalorder %s696_s24, %s696_s24 }
  0x1c   :  { %p567_p11 = scmp.ne.s32.totalorder %s696_s24, %s566_s20  ;;  %p572_p13 = scmp.lt.s32.totalorder %s566_s20, %s566_s20 }
  0x1e   :  { %p573_p0 = por %p572_p13, %p571_p12 }
  0x20   :  { %p574_p1 = pnand %p573_p0, %p567_p11 }
  0x22   :  { %577 = shalt.err (!%p574_p1)
}
  0x23   :  { %27 = dma.hbm_to_vmem [thread:$0]  %s795_s0, 256, %s696_s24, [#allocation3], %s654_s9, %s654_s9, %s655_s10  }
  0x24   :  { %s656_s22 = smov [#allocation7]   ;;  %s578_s27 = scalar_lea.hbm %s799_s4, 2048 }
  0x25   :  { %s49_s23 = sshll.u32 %s656_s22, 4  ;;  %p579_p2 = scmp.ne.s32.totalorder %s799_s4, %s578_s27  ;;  %s50_s23 = int_to_ptr.vmem [resolvable:$true] %s49_s23 }
  0x26   :  { %p582_p3 = scmp.lt.u32.totalorder %s578_s27, %s799_s4 }
  0x28   :  { %p584_p4 = pnand %p582_p3, %p579_p2 }
  0x2a   :  { %587 = shalt.err (!%p584_p4)
}
  0x2b   :  { %s588_s8 = scalar_lea.vmem %s50_s23, 2048  ;;  %p593_p6 = scmp.lt.s32.totalorder %s50_s23, %s50_s23 }
  0x2c   :  { %p589_p5 = scmp.ne.s32.totalorder %s50_s23, %s588_s8  ;;  %p594_p7 = scmp.lt.s32.totalorder %s588_s8, %s588_s8 }
  0x2e   :  { %p595_p8 = por %p594_p7, %p593_p6 }
  0x30   :  { %p596_p9 = pnand %p595_p8, %p589_p5 }
  0x32   :  { %599 = shalt.err (!%p596_p9)
}
  0x33   :  { %55 = dma.hbm_to_vmem [thread:$0]  %s799_s4, 2048, %s50_s23, [#allocation6], %s654_s9, %s654_s9, %s655_s10  }
  0x34   :  { %644 = dma.done.wait [#allocation3], 256  }
  0x35   :  { %645 = vsyncadd [#allocation3], 4294967040 }
  0x36   :  { %646 = dma.done.wait [#allocation6], 2304  }
  0x37   :  { %647 = vsyncadd [#allocation6], 4294964992  ;;  %v69_v0 = vld [vmem:[#allocation7] sm:$0xff]  ;;  %v70_v1 = vld [vmem:[#allocation7 + $0x8] sm:$0xff]  ;;  %s657_s12 = smov [#allocation8]   ;;  %s658_s14 = smov [#allocation9]  }
  0x38   :  { %v71_v2 = vld [vmem:[#allocation7 + $0x10] sm:$0xff]  ;;  %v453_v3 = vpack.c.bf16 %v70_v1, %v69_v0  ;;  %v72_v4 = vld [vmem:[#allocation7 + $0x18] sm:$0xff]  ;;  %v73_v6 = vld [vmem:[#allocation7 + $0x20] sm:$0xff]  ;;  %s298_s13 = sshll.u32 %s657_s12, 4  ;;  %s299_s13 = int_to_ptr.vmem [resolvable:$true] %s298_s13 }
  0x39   :  { %v457_v5 = vpack.c.bf16 %v72_v4, %v71_v2  ;;  %v74_v7 = vld [vmem:[#allocation7 + $0x28] sm:$0xff]  ;;  %v748_v9 = vld [vmem:[#allocation2] sm:$0xff]  ;;  %v750_v10 = vld [vmem:[#allocation5] sm:$0xff]  ;;  %p605_p11 = scmp.lt.s32.totalorder %s299_s13, %s299_s13 }
  0x3a   :  { %454 = vmatprep.subr.bf16.mxu0 %v453_v3  ;;  %486 = vmatprep.subr.bf16.mxu1 %v453_v3  ;;  %v461_v8 = vpack.c.bf16 %v74_v7, %v73_v6  ;;  %v75_v11 = vld [vmem:[#allocation7 + $0x30] sm:$0xff]  ;;  %v76_v12 = vld [vmem:[#allocation7 + $0x38] sm:$0xff]  ;;  %v87_v13 = vmul.f32 %v748_v9, %v748_v9  ;;  %v164_v14 = vmul.f32 %v750_v10, %v750_v10  ;;  %v77_v16 = vld [vmem:[#allocation7 + $0x40] sm:$0xff] }
  0x3b   :  { %456 = vmatpush3.bf16.msra.mxu0 %v453_v3  ;;  %488 = vmatpush3.bf16.msra.mxu1 %v453_v3  ;;  %v465_v15 = vpack.c.bf16 %v76_v12, %v75_v11  ;;  %v78_v17 = vld [vmem:[#allocation7 + $0x48] sm:$0xff]  ;;  %v79_v19 = vld [vmem:[#allocation7 + $0x50] sm:$0xff]  ;;  %v80_v20 = vld [vmem:[#allocation7 + $0x58] sm:$0xff] }
  0x3c   :  { %458 = vmatprep.subr.bf16.mxu0 %v457_v5  ;;  %490 = vmatprep.subr.bf16.mxu1 %v457_v5  ;;  %v469_v18 = vpack.c.bf16 %v78_v17, %v77_v16  ;;  %v473_v21 = vpack.c.bf16 %v80_v20, %v79_v19  ;;  %v81_v22 = vld [vmem:[#allocation7 + $0x60] sm:$0xff]  ;;  %v82_v23 = vld [vmem:[#allocation7 + $0x68] sm:$0xff]  ;;  %v83_v25 = vld [vmem:[#allocation7 + $0x70] sm:$0xff] }
  0x3d   :  { %415 = vmatprep.mubr.f32.mxu0 %v87_v13  ;;  %450 = vmatprep.mubr.f32.mxu1 %v164_v14  ;;  %v477_v24 = vpack.c.bf16 %v82_v23, %v81_v22  ;;  %v84_v26 = vld [vmem:[#allocation7 + $0x78] sm:$0xff]  ;;  %v66_v28 = vld [vmem:[#allocation2 + $0x8] sm:$0xff]  ;;  %v327_v45 = vld [vmem:[%s797_s2] ss:$0 sm:$0xff]  ;;  %s310_s2 = sshll.u32 %s658_s14, 4  ;;  %s764_s2 = int_to_ptr.vmem [resolvable:$true] %s310_s2 }
  0x3e   :  { %v481_v27 = vpack.c.bf16 %v84_v26, %v83_v25  ;;  %v68_v29 = vld [vmem:[#allocation5 + $0x8] sm:$0xff]  ;;  %v88_v30 = vmul.f32 %v66_v28, %v66_v28  ;;  %v330_v48 = vld [vmem:[%s798_s3] ss:$0 sm:$0xff]  ;;  %s600_s3 = scalar_lea.vmem %s299_s13, 128 }
  0x3f   :  { %460 = vmatpush3.bf16.msra.mxu0 %v457_v5  ;;  %492 = vmatpush3.bf16.msra.mxu1 %v457_v5  ;;  %v165_v31 = vmul.f32 %v68_v29, %v68_v29  ;;  %p601_p10 = scmp.ne.s32.totalorder %s299_s13, %s600_s3  ;;  %p606_p12 = scmp.lt.s32.totalorder %s600_s3, %s600_s3 }
  0x40   :  { %462 = vmatprep.subr.bf16.mxu0 %v461_v8  ;;  %494 = vmatprep.subr.bf16.mxu1 %v461_v8 }
  0x41   :  { %p607_p13 = por %p606_p12, %p605_p11 }
  0x43   :  { %464 = vmatpush3.bf16.msra.mxu0 %v461_v8  ;;  %496 = vmatpush3.bf16.msra.mxu1 %v461_v8  ;;  %p608_p0 = pnand %p607_p13, %p601_p10 }
  0x44   :  { %466 = vmatprep.subr.bf16.mxu0 %v465_v15  ;;  %498 = vmatprep.subr.bf16.mxu1 %v465_v15 }
  0x47   :  { %468 = vmatpush3.bf16.msra.mxu0 %v465_v15  ;;  %500 = vmatpush3.bf16.msra.mxu1 %v465_v15 }
  0x48   :  { %470 = vmatprep.subr.bf16.mxu0 %v469_v18  ;;  %502 = vmatprep.subr.bf16.mxu1 %v469_v18 }
  0x4b   :  { %472 = vmatpush3.bf16.msra.mxu0 %v469_v18  ;;  %504 = vmatpush3.bf16.msra.mxu1 %v469_v18 }
  0x4c   :  { %474 = vmatprep.subr.bf16.mxu0 %v473_v21  ;;  %506 = vmatprep.subr.bf16.mxu1 %v473_v21 }
  0x4f   :  { %476 = vmatpush3.bf16.msra.mxu0 %v473_v21  ;;  %508 = vmatpush3.bf16.msra.mxu1 %v473_v21 }
  0x50   :  { %478 = vmatprep.subr.bf16.mxu0 %v477_v24  ;;  %510 = vmatprep.subr.bf16.mxu1 %v477_v24 }
  0x53   :  { %480 = vmatpush3.bf16.msra.mxu0 %v477_v24  ;;  %512 = vmatpush3.bf16.msra.mxu1 %v477_v24 }
  0x54   :  { %482 = vmatprep.subr.bf16.mxu0 %v481_v27  ;;  %514 = vmatprep.subr.bf16.mxu1 %v481_v27 }
  0x57   :  { %484 = vmatpush3.bf16.msra.mxu0 %v481_v27  ;;  %516 = vmatpush3.bf16.msra.mxu1 %v481_v27 }
  0x5a   :  { %416 = vmatmul.mubr.f32.vlgmr.msra.gmra.mrb[0].mxu0 %v88_v30  ;;  %451 = vmatmul.mubr.f32.vlgmr.msra.gmra.mrb[0].mxu1 %v165_v31 }
 0x12d   :  { %v417_v32 = vpop.f32.mrb[0].mxu0  ;;  %v452_v33 = vpop.f32.mrb[0].mxu1 }
 0x12e   :  { %v242_v34 = vmul.f32 0.03125, %v417_v32  ;;  %v248_v35 = vmul.f32 0.03125, %v452_v33  ;;  %v155_v36 = vpop.f32.mrb[1].mxu0  ;;  %v232_v37 = vpop.f32.mrb[1].mxu1 }
 0x12f   :  { %v241_v38 = vmul.f32 0.03125, %v155_v36  ;;  %v247_v39 = vmul.f32 0.03125, %v232_v37 }
 0x130   :  { %v244_v40 = vadd.f32 1e-06, %v242_v34  ;;  %v250_v41 = vadd.f32 1e-06, %v248_v35 }
 0x131   :  { %v243_v42 = vadd.f32 1e-06, %v241_v38  ;;  %v249_v43 = vadd.f32 1e-06, %v247_v39 }
 0x132   :  { %526 = vrsqrt.f32 %v244_v40 }
 0x133   :  { %528 = vrsqrt.f32 %v250_v41 }
 0x134   :  { %530 = vrsqrt.f32 %v243_v42 }
 0x135   :  { %532 = vrsqrt.f32 %v249_v43 }
 0x13c   :  { %v527_v44 = vpop.eup %526 }
 0x13d   :  { %v529_v46 = vpop.eup %528  ;;  %v254_v47 = vmul.f32 %v527_v44, %v66_v28 }
 0x13e   :  { %v531_v49 = vpop.eup %530  ;;  %v274_v50 = vmul.f32 %v529_v46, %v68_v29 }
 0x13f   :  { %v533_v51 = vpop.eup %532  ;;  %v253_v52 = vmul.f32 %v531_v49, %v748_v9  ;;  %v262_v53 = vmul.f32 %v327_v45, %v254_v47 }
 0x140   :  { %v273_v54 = vmul.f32 %v533_v51, %v750_v10  ;;  %v282_v55 = vmul.f32 %v330_v48, %v274_v50 }
 0x141   :  { %v261_v56 = vmul.f32 %v327_v45, %v253_v52 }
 0x142   :  { %v281_v57 = vmul.f32 %v330_v48, %v273_v54 }
 0x143   :  { %v340_v58 = vpack.c.bf16 %v262_v53, %v261_v56 }
 0x144   :  { %v345_v59 = vpack.c.bf16 %v282_v55, %v281_v57 }
 0x145   :  { %341 = vst [vmem:[#allocation8] sm:$0xff] %v340_v58  }
 0x146   :  { %611 = shalt.err (!%p608_p0)
}
 0x147   :  { %s612_s17 = scalar_lea.hbm %s800_s5, 128 }
 0x148   :  { %p613_p1 = scmp.ne.s32.totalorder %s800_s5, %s612_s17  ;;  %p616_p2 = scmp.lt.u32.totalorder %s612_s17, %s800_s5 }
 0x14a   :  { %p618_p3 = pnand %p616_p2, %p613_p1 }
 0x14c   :  { %621 = shalt.err (!%p618_p3)
}
 0x14d   :  { %s659_s21 = smov 64   ;;  %s660_s22 = smov 4   ;;  %346 = vst [vmem:[#allocation9] sm:$0xff] %v345_v59  }
 0x14e   :  { %304 = dma.vmem_to_hbm [thread:$0]  %s299_s13, 128, %s800_s5, [#allocation4], %s659_s21, %s659_s21, %s660_s22  }
 0x14f   :  { %s622_s26 = scalar_lea.vmem %s764_s2, 128  ;;  %p627_p5 = scmp.lt.s32.totalorder %s764_s2, %s764_s2 }
 0x150   :  { %p623_p4 = scmp.ne.s32.totalorder %s764_s2, %s622_s26  ;;  %p628_p6 = scmp.lt.s32.totalorder %s622_s26, %s622_s26 }
 0x152   :  { %p629_p7 = por %p628_p6, %p627_p5 }
 0x154   :  { %p630_p8 = pnand %p629_p7, %p623_p4 }
 0x156   :  { %633 = shalt.err (!%p630_p8)
}
 0x157   :  { %s634_s29 = scalar_lea.hbm %s801_s6, 128 }
 0x158   :  { %p635_p9 = scmp.ne.s32.totalorder %s801_s6, %s634_s29  ;;  %p638_p10 = scmp.lt.u32.totalorder %s634_s29, %s801_s6 }
 0x15a   :  { %p640_p11 = pnand %p638_p10, %p635_p9 }
 0x15c   :  { %643 = shalt.err (!%p640_p11)
}
 0x15d   :  { %316 = dma.vmem_to_hbm [thread:$0]  %s764_s2, 128, %s801_s6, [#allocation10], %s659_s21, %s659_s21, %s660_s22  }
 0x15e   :  { %648 = dma.done.wait [#allocation4], 128  }
 0x15f   :  { %649 = vsyncadd [#allocation4], 4294967168 }
 0x160   :  { %650 = dma.done.wait [#allocation10], 128  }
 0x161   :  { %651 = vsyncadd [#allocation10], 4294967168 }
 0x162   :  { %323 = vsyncpa [#allocation3], 1 }
 0x163   :  { %324 = vsyncpa [#allocation6], 1 }
 0x164   :  { %325 = vsyncpa [#allocation4], 1 }
 0x165   :  { %326 = vsyncpa [#allocation10], 1 }

</bundles_post_ra>
